<compile_context>
chip_gen: v7x
topology: tpu7x:2x2x1
jax: 0.10.0
libtpu: 0.0.40
codegen_flags: <defaults>
</compile_context>

<pallas_src>
import functools

import jax
import jax.numpy as jnp
from jax import lax
from jax.experimental import pallas as pl
from jax.experimental.pallas import tpu as pltpu

_SCAN_CHUNK = 4          # radix of the chunked linear scan (W^1..W^4 precomputed)
_MAX_UNROLLED_SEQ = 128  # above this, use the partially-unrolled serial path


def rnn_encoder_kernel(x_ref, w_ih_x_ref, b_ih_ref, pows_ref,
                       w_io_x_hbm, w_io_h_hbm, b_io_hbm,
                       out_ref, h_out_ref,
                       w_io_x_buf, w_io_h_buf, b_io_buf, dma_sems,
                       xproj_ref=None, *, seq_len, chunk):
    """Whole sequence in a single invocation (no grid).

    Recurrence (affine -- the reference RNNCell has no activation):
        c_t = x_t @ W_ih_x + b_ih
        h_t = h_{t-1} @ W_hh + c_t ,   h_{-1} = 0
    Output head (last step only; PyTorch's `combined` uses the *pre-update*
    hidden, i.e. h_{S-2}):
        logits = x_{S-1} @ W_io_x + h_{S-2} @ W_io_h + b_io
        out    = log_softmax(logits) ,  h_out = h_{S-1}
    """
    # Kick off the output-head weight DMAs immediately; they are only needed
    # after the recurrence, so the copies overlap all of the work below.
    cp_wx = pltpu.make_async_copy(w_io_x_hbm, w_io_x_buf, dma_sems.at[0])
    cp_wh = pltpu.make_async_copy(w_io_h_hbm, w_io_h_buf, dma_sems.at[1])
    cp_b = pltpu.make_async_copy(b_io_hbm, b_io_buf, dma_sems.at[2])
    cp_wx.start()
    cp_wh.start()
    cp_b.start()

    hp = pows_ref.shape[-1]

    def w_pow(k):                      # W_hh^k, k >= 1 (precomputed in prep)
        return pows_ref[k - 1]

    # Time-parallel input projection for ALL timesteps: one (S,E)x(E,Hp)
    # matmul, kept in vregs (padded hidden lanes are exactly zero).
    xproj = (jnp.dot(x_ref[...], w_ih_x_ref[...],
                     preferred_element_type=jnp.float32)
             + b_ih_ref[...])                                   # (S, Hp)

    n_steps = seq_len - 1          # recurrence steps needed to reach h_{S-2}

    if xproj_ref is None:
        # ---- Chunked (radix-`chunk`) linear scan, fully static/unrolled ----
        #   h_{S-2} = (((e_0 @ W^C + e_1) @ W^C + ...) @ W^C + e_{M-1}) @ W^r + f
        # with e_m = sum_i c_{mC+i} @ W^{C-1-i} built from time-parallel rows.
        m_full, rem = divmod(n_steps, chunk)
        max_k = max(chunk - 1 if m_full > 0 else 0, rem - 1)

        proj = [xproj]                          # proj[k] = xproj @ W_hh^k
        for k in range(1, max_k + 1):
            proj.append(jnp.dot(xproj, w_pow(k),
                                preferred_element_type=jnp.float32))

        def row(k, t):                          # c_t @ W^k as a (1, Hp) value
            return proj[k][t:t + 1, :]

        def chunk_sum(start, length):           # sum_i c_{start+i} @ W^{L-1-i}
            acc = row(length - 1, start)
            for i in range(1, length):
                acc = acc + row(length - 1 - i, start + i)
            return acc

        if n_steps == 0:
            h_prev = jnp.zeros((1, hp), jnp.float32)
        elif m_full == 0:
            h_prev = chunk_sum(0, rem)          # starts from h_{-1} = 0
        else:
            h = chunk_sum(0, chunk)             # h_{C-1}; zero-state matmul skipped
            for m in range(1, m_full):
                h = (jnp.dot(h, w_pow(chunk),
                             preferred_element_type=jnp.float32)
                     + chunk_sum(m * chunk, chunk))
            if rem > 0:
                h = (jnp.dot(h, w_pow(rem),
                             preferred_element_type=jnp.float32)
                     + chunk_sum(m_full * chunk, rem))
            h_prev = h
        c_last = xproj[seq_len - 1:seq_len, :]
    else:
        # ---- Long-sequence fallback: serial recurrence, partial unroll ----
        w_hh = w_pow(1)
        xproj_ref[...] = xproj
        h0 = xproj_ref[pl.ds(0, 1), :]          # h_0; zero-state matmul skipped

        def body(t, h):
            return (xproj_ref[pl.ds(t, 1), :]
                    + jnp.dot(h, w_hh, preferred_element_type=jnp.float32))

        h_prev = lax.fori_loop(1, n_steps, body, h0, unroll=8)
        c_last = xproj_ref[pl.ds(seq_len - 1, 1), :]

    # Final hidden update + output head, computed exactly once.
    h_last = c_last + jnp.dot(h_prev, w_pow(1),
                              preferred_element_type=jnp.float32)

    x_last = x_ref[pl.ds(seq_len - 1, 1), :]
    cp_wx.wait()
    cp_wh.wait()
    cp_b.wait()
    logits = (jnp.dot(x_last, w_io_x_buf[...], preferred_element_type=jnp.float32)
              + jnp.dot(h_prev, w_io_h_buf[...], preferred_element_type=jnp.float32)
              + b_io_buf[...])                  # (1, Vp); padded lanes ~ -1e30

    # LogSoftmax(dim=1), max-stabilized; padded vocab lanes underflow exp() to 0.
    m = jnp.max(logits, axis=1, keepdims=True)
    lse = m + jnp.log(jnp.sum(jnp.exp(logits - m), axis=1, keepdims=True))

    out_ref[...] = logits - lse
    h_out_ref[...] = h_last


def prepare_encoder_params(w_ih, b_ih, w_io, b_io, *, embed_dim,
                           num_powers=_SCAN_CHUNK):
    """One-time weight preparation (hoisted out of the per-call path).

    w_ih: (E+H, H), b_ih: (H,), w_io: (E+H, V), b_io: (V,) -- stored
    pre-transposed as (in_features, out_features).  Splits the concatenated
    weights, zero-pads hidden/vocab lane dims to multiples of 128 and
    precomputes W_hh^1..W_hh^num_powers for the in-kernel chunked scan.
    """
    hidden_size = w_ih.shape[1]
    vocab_dim = w_io.shape[1]
    assert w_ih.shape[0] == embed_dim + hidden_size
    assert w_io.shape[0] == embed_dim + hidden_size

    hp = 128 * pl.cdiv(hidden_size, 128)
    vp = 128 * pl.cdiv(vocab_dim, 128)
    dh, dv = hp - hidden_size, vp - vocab_dim

    w_ih_x = jnp.pad(w_ih[:embed_dim].astype(jnp.float32), ((0, 0), (0, dh)))
    w_hh = jnp.pad(w_ih[embed_dim:].astype(jnp.float32), ((0, dh), (0, dh)))
    b_ih2d = jnp.pad(b_ih.astype(jnp.float32).reshape(1, hidden_size),
                     ((0, 0), (0, dh)))
    w_io_x = jnp.pad(w_io[:embed_dim].astype(jnp.float32), ((0, 0), (0, dv)))
    w_io_h = jnp.pad(w_io[embed_dim:].astype(jnp.float32), ((0, dh), (0, dv)))
    # Padded vocab lanes get a huge negative bias so they never win the max
    # nor contribute to the softmax sum (f32-safe; sliced off after the call).
    b_io2d = jnp.pad(b_io.astype(jnp.float32).reshape(1, vocab_dim),
                     ((0, 0), (0, dv)), constant_values=-1e30)

    # W_hh^1..W_hh^num_powers. Padded rows/cols of W_hh are zero, so every
    # power stays exactly zero there and padded hidden lanes never mix in.
    pows = [w_hh]
    for _ in range(num_powers - 1):
        pows.append(jnp.dot(pows[-1], w_hh, preferred_element_type=jnp.float32))
    w_hh_pows = jnp.stack(pows, axis=0)                       # (C, Hp, Hp)

    return {"w_ih_x": w_ih_x, "b_ih": b_ih2d, "w_hh_pows": w_hh_pows,
            "w_io_x": w_io_x, "w_io_h": w_io_h, "b_io": b_io2d}


@functools.partial(jax.jit, static_argnames=("hidden_size", "vocab_dim"))
def encoder_forward(x, params, *, hidden_size, vocab_dim):
    """x: (batch=1, seq_len, embed_dim) float32; params from
    prepare_encoder_params.  Returns (log_probs (1, V), hidden (1, H)) from
    the final time step."""
    assert x.shape[0] == 1, "RNNCell.init_hidden() hard-codes batch=1"
    _, seq_len, _ = x.shape

    w_hh_pows = params["w_hh_pows"]
    chunk, hp, _ = w_hh_pows.shape
    w_io_x, w_io_h, b_io = params["w_io_x"], params["w_io_h"], params["b_io"]

    x2d = x[0].astype(jnp.float32)                            # (S, E)

    use_scan = seq_len <= _MAX_UNROLLED_SEQ
    scratch = [
        pltpu.VMEM(w_io_x.shape, jnp.float32),   # W_io_x landing buffer
        pltpu.VMEM(w_io_h.shape, jnp.float32),   # W_io_h landing buffer
        pltpu.VMEM(b_io.shape, jnp.float32),     # b_io landing buffer
        pltpu.SemaphoreType.DMA((3,)),
    ]
    if not use_scan:
        scratch.append(pltpu.VMEM((seq_len, hp), jnp.float32))  # xproj spill

    kernel = functools.partial(rnn_encoder_kernel, seq_len=seq_len, chunk=chunk)

    vmem = pl.BlockSpec(memory_space=pltpu.MemorySpace.VMEM)
    hbm_any = pl.BlockSpec(memory_space=pl.ANY)

    out_p, h_p = pl.pallas_call(
        kernel,
        out_shape=(
            jax.ShapeDtypeStruct(b_io.shape, jnp.float32),    # (1, Vp)
            jax.ShapeDtypeStruct((1, hp), jnp.float32),       # (1, Hp)
        ),
        # No grid: single invocation, no pointless input double-buffering.
        in_specs=[
            vmem,      # x
            vmem,      # W_ih_x
            vmem,      # b_ih
            vmem,      # W_hh powers
            hbm_any,   # W_io_x (manually DMA'd, overlapped with recurrence)
            hbm_any,   # W_io_h
            hbm_any,   # b_io
        ],
        out_specs=(vmem, vmem),
        scratch_shapes=scratch,
    )(x2d, params["w_ih_x"], params["b_ih"], w_hh_pows, w_io_x, w_io_h, b_io)

    return out_p[:, :vocab_dim], h_p[:, :hidden_size]


def encoder_reference(x, w_ih, b_ih, w_io, b_io):
    """Pure-JAX reference mirroring the PyTorch loop."""
    _, seq_len, _ = x.shape
    hidden_size = w_ih.shape[1]
    h = jnp.zeros((1, hidden_size), jnp.float32)
    out = None
    for t in range(seq_len):
        combined = jnp.concatenate([x[:, t, :], h], axis=1)
        h = combined @ w_ih + b_ih
        logits = combined @ w_io + b_io
        out = jax.nn.log_softmax(logits, axis=1)
    return out, h


if __name__ == "__main__":
    # Small shapes consistent with the module: Encoder passes config.vocab_dim
    # as the RNNCell embedding dim, so embed_dim == vocab_dim here.
    embed_dim = 16
    hidden_size = 32
    vocab_dim = 16
    seq_len = 8
    batch = 1           # fixed by RNNCell.init_hidden()

    key = jax.random.PRNGKey(0)
    k_x, k_wih, k_bih, k_wio, k_bio = jax.random.split(key, 5)

    in_features = embed_dim + hidden_size
    bound = 1.0 / jnp.sqrt(jnp.float32(in_features))  # nn.Linear default init

    x = jax.random.normal(k_x, (batch, seq_len, embed_dim), jnp.float32)
    # Stored pre-transposed: (in_features, out_features).
    w_ih = jax.random.uniform(k_wih, (in_features, hidden_size), jnp.float32,
                              -bound, bound)
    b_ih = jax.random.uniform(k_bih, (hidden_size,), jnp.float32, -bound, bound)
    w_io = jax.random.uniform(k_wio, (in_features, vocab_dim), jnp.float32,
                              -bound, bound)
    b_io = jax.random.uniform(k_bio, (vocab_dim,), jnp.float32, -bound, bound)

    # One-time weight prep (split / pad / W_hh powers), then the kernel call.
    params = prepare_encoder_params(w_ih, b_ih, w_io, b_io, embed_dim=embed_dim)
    out, h_final = encoder_forward(x, params, hidden_size=hidden_size,
                                   vocab_dim=vocab_dim)
    jax.block_until_ready((out, h_final))

    ref_out, ref_h = encoder_reference(x, w_ih, b_ih, w_io, b_io)
    assert out.shape == ref_out.shape and h_final.shape == ref_h.shape
    assert jnp.allclose(out, ref_out, atol=2e-5, rtol=2e-5), \
        float(jnp.max(jnp.abs(out - ref_out)))
    assert jnp.allclose(h_final, ref_h, atol=2e-5, rtol=2e-5), \
        float(jnp.max(jnp.abs(h_final - ref_h)))

    print("KERNEL_OK")
</pallas_src>

<mosaic_0001>
module attributes {stable_mosaic.version = 11 : i64} {
  func.func @rnn_encoder_kernel(%arg0: memref<8x16xf32, #tpu.memory_space<vmem>>, %arg1: memref<16x128xf32, #tpu.memory_space<vmem>>, %arg2: memref<1x128xf32, #tpu.memory_space<vmem>>, %arg3: memref<4x128x128xf32, #tpu.memory_space<vmem>>, %arg4: memref<16x128xf32, #tpu.memory_space<any>>, %arg5: memref<128x128xf32, #tpu.memory_space<any>>, %arg6: memref<1x128xf32, #tpu.memory_space<any>>, %arg7: memref<1x128xf32, #tpu.memory_space<vmem>>, %arg8: memref<1x128xf32, #tpu.memory_space<vmem>>, %arg9: memref<16x128xf32, #tpu.memory_space<vmem>>, %arg10: memref<128x128xf32, #tpu.memory_space<vmem>>, %arg11: memref<1x128xf32, #tpu.memory_space<vmem>>, %arg12: memref<3x!tpu.dma_semaphore, #tpu.memory_space<semaphore_mem>>) attributes {dimension_semantics = [], scalar_prefetch = 0 : i64, scratch_operands = 4 : i64, tpu.core_type = #tpu.core_type<tc>} {
    %c0_i32 = arith.constant 0 : i32
    %0 = tpu.memref_slice %arg12[%c0_i32] : memref<3x!tpu.dma_semaphore, #tpu.memory_space<semaphore_mem>> -> memref<1x!tpu.dma_semaphore, #tpu.memory_space<semaphore_mem>>
    %1 = tpu.memref_squeeze %0 : memref<1x!tpu.dma_semaphore, #tpu.memory_space<semaphore_mem>> -> memref<!tpu.dma_semaphore, #tpu.memory_space<semaphore_mem>>
    tpu.enqueue_dma source(%arg4 : memref<16x128xf32, #tpu.memory_space<any>>) target(%arg9 : memref<16x128xf32, #tpu.memory_space<vmem>>) target_semaphore(%1 : memref<!tpu.dma_semaphore, #tpu.memory_space<semaphore_mem>>)
    %c1_i32 = arith.constant 1 : i32
    %2 = tpu.memref_slice %arg12[%c1_i32] : memref<3x!tpu.dma_semaphore, #tpu.memory_space<semaphore_mem>> -> memref<1x!tpu.dma_semaphore, #tpu.memory_space<semaphore_mem>>
    %3 = tpu.memref_squeeze %2 : memref<1x!tpu.dma_semaphore, #tpu.memory_space<semaphore_mem>> -> memref<!tpu.dma_semaphore, #tpu.memory_space<semaphore_mem>>
    tpu.enqueue_dma source(%arg5 : memref<128x128xf32, #tpu.memory_space<any>>) target(%arg10 : memref<128x128xf32, #tpu.memory_space<vmem>>) target_semaphore(%3 : memref<!tpu.dma_semaphore, #tpu.memory_space<semaphore_mem>>)
    %c2_i32 = arith.constant 2 : i32
    %4 = tpu.memref_slice %arg12[%c2_i32] : memref<3x!tpu.dma_semaphore, #tpu.memory_space<semaphore_mem>> -> memref<1x!tpu.dma_semaphore, #tpu.memory_space<semaphore_mem>>
    %5 = tpu.memref_squeeze %4 : memref<1x!tpu.dma_semaphore, #tpu.memory_space<semaphore_mem>> -> memref<!tpu.dma_semaphore, #tpu.memory_space<semaphore_mem>>
    tpu.enqueue_dma source(%arg6 : memref<1x128xf32, #tpu.memory_space<any>>) target(%arg11 : memref<1x128xf32, #tpu.memory_space<vmem>>) target_semaphore(%5 : memref<!tpu.dma_semaphore, #tpu.memory_space<semaphore_mem>>)
    %c0 = arith.constant 0 : index
    %c0_0 = arith.constant 0 : index
    %6 = vector.load %arg0[%c0, %c0_0] : memref<8x16xf32, #tpu.memory_space<vmem>>, vector<8x16xf32>
    %c0_1 = arith.constant 0 : index
    %c0_2 = arith.constant 0 : index
    %7 = vector.load %arg1[%c0_1, %c0_2] : memref<16x128xf32, #tpu.memory_space<vmem>>, vector<16x128xf32>
    %cst = arith.constant dense<0.000000e+00> : vector<8x128xf32>
    %8 = tpu.matmul %6, %7, %cst {dimension_numbers = #tpu.dot_dimension_numbers<[1], [0], [0], [1], [0, 0, 1, 1], [], []>} : vector<8x16xf32>, vector<16x128xf32>, vector<8x128xf32> -> vector<8x128xf32>
    %c0_3 = arith.constant 0 : index
    %c0_4 = arith.constant 0 : index
    %9 = vector.load %arg2[%c0_3, %c0_4] : memref<1x128xf32, #tpu.memory_space<vmem>>, vector<1x128xf32>
    %10 = vector.broadcast %9 : vector<1x128xf32> to vector<8x128xf32>
    %11 = arith.addf %8, %10 : vector<8x128xf32>
    %c0_5 = arith.constant 0 : index
    %c0_6 = arith.constant 0 : index
    %c0_7 = arith.constant 0 : index
    %12 = vector.load %arg3[%c0_5, %c0_6, %c0_7] : memref<4x128x128xf32, #tpu.memory_space<vmem>>, vector<1x128x128xf32>
    %13 = vector.shape_cast %12 : vector<1x128x128xf32> to vector<128x128xf32>
    %cst_8 = arith.constant dense<0.000000e+00> : vector<8x128xf32>
    %14 = tpu.matmul %11, %13, %cst_8 {dimension_numbers = #tpu.dot_dimension_numbers<[1], [0], [0], [1], [0, 0, 1, 1], [], []>} : vector<8x128xf32>, vector<128x128xf32>, vector<8x128xf32> -> vector<8x128xf32>
    %c1 = arith.constant 1 : index
    %c0_9 = arith.constant 0 : index
    %c0_10 = arith.constant 0 : index
    %15 = vector.load %arg3[%c1, %c0_9, %c0_10] : memref<4x128x128xf32, #tpu.memory_space<vmem>>, vector<1x128x128xf32>
    %16 = vector.shape_cast %15 : vector<1x128x128xf32> to vector<128x128xf32>
    %cst_11 = arith.constant dense<0.000000e+00> : vector<8x128xf32>
    %17 = tpu.matmul %11, %16, %cst_11 {dimension_numbers = #tpu.dot_dimension_numbers<[1], [0], [0], [1], [0, 0, 1, 1], [], []>} : vector<8x128xf32>, vector<128x128xf32>, vector<8x128xf32> -> vector<8x128xf32>
    %c2 = arith.constant 2 : index
    %c0_12 = arith.constant 0 : index
    %c0_13 = arith.constant 0 : index
    %18 = vector.load %arg3[%c2, %c0_12, %c0_13] : memref<4x128x128xf32, #tpu.memory_space<vmem>>, vector<1x128x128xf32>
    %19 = vector.shape_cast %18 : vector<1x128x128xf32> to vector<128x128xf32>
    %cst_14 = arith.constant dense<0.000000e+00> : vector<8x128xf32>
    %20 = tpu.matmul %11, %19, %cst_14 {dimension_numbers = #tpu.dot_dimension_numbers<[1], [0], [0], [1], [0, 0, 1, 1], [], []>} : vector<8x128xf32>, vector<128x128xf32>, vector<8x128xf32> -> vector<8x128xf32>
    %21 = vector.extract_strided_slice %20 {offsets = [0, 0], sizes = [1, 128], strides = [1, 1]} : vector<8x128xf32> to vector<1x128xf32>
    %22 = vector.extract_strided_slice %17 {offsets = [1, 0], sizes = [1, 128], strides = [1, 1]} : vector<8x128xf32> to vector<1x128xf32>
    %23 = arith.addf %21, %22 : vector<1x128xf32>
    %24 = vector.extract_strided_slice %14 {offsets = [2, 0], sizes = [1, 128], strides = [1, 1]} : vector<8x128xf32> to vector<1x128xf32>
    %25 = arith.addf %23, %24 : vector<1x128xf32>
    %26 = vector.extract_strided_slice %11 {offsets = [3, 0], sizes = [1, 128], strides = [1, 1]} : vector<8x128xf32> to vector<1x128xf32>
    %27 = arith.addf %25, %26 : vector<1x128xf32>
    %c2_15 = arith.constant 2 : index
    %c0_16 = arith.constant 0 : index
    %c0_17 = arith.constant 0 : index
    %28 = vector.load %arg3[%c2_15, %c0_16, %c0_17] : memref<4x128x128xf32, #tpu.memory_space<vmem>>, vector<1x128x128xf32>
    %29 = vector.shape_cast %28 : vector<1x128x128xf32> to vector<128x128xf32>
    %cst_18 = arith.constant dense<0.000000e+00> : vector<1x128xf32>
    %30 = tpu.matmul %27, %29, %cst_18 {dimension_numbers = #tpu.dot_dimension_numbers<[1], [0], [0], [1], [0, 0, 1, 1], [], []>} : vector<1x128xf32>, vector<128x128xf32>, vector<1x128xf32> -> vector<1x128xf32>
    %31 = vector.extract_strided_slice %17 {offsets = [4, 0], sizes = [1, 128], strides = [1, 1]} : vector<8x128xf32> to vector<1x128xf32>
    %32 = vector.extract_strided_slice %14 {offsets = [5, 0], sizes = [1, 128], strides = [1, 1]} : vector<8x128xf32> to vector<1x128xf32>
    %33 = arith.addf %31, %32 : vector<1x128xf32>
    %34 = vector.extract_strided_slice %11 {offsets = [6, 0], sizes = [1, 128], strides = [1, 1]} : vector<8x128xf32> to vector<1x128xf32>
    %35 = arith.addf %33, %34 : vector<1x128xf32>
    %36 = arith.addf %30, %35 : vector<1x128xf32>
    %37 = vector.extract_strided_slice %11 {offsets = [7, 0], sizes = [1, 128], strides = [1, 1]} : vector<8x128xf32> to vector<1x128xf32>
    %c0_19 = arith.constant 0 : index
    %c0_20 = arith.constant 0 : index
    %c0_21 = arith.constant 0 : index
    %38 = vector.load %arg3[%c0_19, %c0_20, %c0_21] : memref<4x128x128xf32, #tpu.memory_space<vmem>>, vector<1x128x128xf32>
    %39 = vector.shape_cast %38 : vector<1x128x128xf32> to vector<128x128xf32>
    %cst_22 = arith.constant dense<0.000000e+00> : vector<1x128xf32>
    %40 = tpu.matmul %36, %39, %cst_22 {dimension_numbers = #tpu.dot_dimension_numbers<[1], [0], [0], [1], [0, 0, 1, 1], [], []>} : vector<1x128xf32>, vector<128x128xf32>, vector<1x128xf32> -> vector<1x128xf32>
    %41 = arith.addf %37, %40 : vector<1x128xf32>
    %c7 = arith.constant 7 : index
    %c0_23 = arith.constant 0 : index
    %42 = vector.load %arg0[%c7, %c0_23] : memref<8x16xf32, #tpu.memory_space<vmem>>, vector<1x16xf32>
    %c0_i32_24 = arith.constant 0 : i32
    %43 = tpu.memref_slice %arg12[%c0_i32_24] : memref<3x!tpu.dma_semaphore, #tpu.memory_space<semaphore_mem>> -> memref<1x!tpu.dma_semaphore, #tpu.memory_space<semaphore_mem>>
    %44 = tpu.memref_squeeze %43 : memref<1x!tpu.dma_semaphore, #tpu.memory_space<semaphore_mem>> -> memref<!tpu.dma_semaphore, #tpu.memory_space<semaphore_mem>>
    tpu.wait_dma2 semaphore(%44 : memref<!tpu.dma_semaphore, #tpu.memory_space<semaphore_mem>>) src(%arg4 : memref<16x128xf32, #tpu.memory_space<any>>) dst(%arg9 : memref<16x128xf32, #tpu.memory_space<vmem>>)
    %c1_i32_25 = arith.constant 1 : i32
    %45 = tpu.memref_slice %arg12[%c1_i32_25] : memref<3x!tpu.dma_semaphore, #tpu.memory_space<semaphore_mem>> -> memref<1x!tpu.dma_semaphore, #tpu.memory_space<semaphore_mem>>
    %46 = tpu.memref_squeeze %45 : memref<1x!tpu.dma_semaphore, #tpu.memory_space<semaphore_mem>> -> memref<!tpu.dma_semaphore, #tpu.memory_space<semaphore_mem>>
    tpu.wait_dma2 semaphore(%46 : memref<!tpu.dma_semaphore, #tpu.memory_space<semaphore_mem>>) src(%arg5 : memref<128x128xf32, #tpu.memory_space<any>>) dst(%arg10 : memref<128x128xf32, #tpu.memory_space<vmem>>)
    %c2_i32_26 = arith.constant 2 : i32
    %47 = tpu.memref_slice %arg12[%c2_i32_26] : memref<3x!tpu.dma_semaphore, #tpu.memory_space<semaphore_mem>> -> memref<1x!tpu.dma_semaphore, #tpu.memory_space<semaphore_mem>>
    %48 = tpu.memref_squeeze %47 : memref<1x!tpu.dma_semaphore, #tpu.memory_space<semaphore_mem>> -> memref<!tpu.dma_semaphore, #tpu.memory_space<semaphore_mem>>
    tpu.wait_dma2 semaphore(%48 : memref<!tpu.dma_semaphore, #tpu.memory_space<semaphore_mem>>) src(%arg6 : memref<1x128xf32, #tpu.memory_space<any>>) dst(%arg11 : memref<1x128xf32, #tpu.memory_space<vmem>>)
    %c0_27 = arith.constant 0 : index
    %c0_28 = arith.constant 0 : index
    %49 = vector.load %arg9[%c0_27, %c0_28] : memref<16x128xf32, #tpu.memory_space<vmem>>, vector<16x128xf32>
    %cst_29 = arith.constant dense<0.000000e+00> : vector<1x128xf32>
    %50 = tpu.matmul %42, %49, %cst_29 {dimension_numbers = #tpu.dot_dimension_numbers<[1], [0], [0], [1], [0, 0, 1, 1], [], []>} : vector<1x16xf32>, vector<16x128xf32>, vector<1x128xf32> -> vector<1x128xf32>
    %c0_30 = arith.constant 0 : index
    %c0_31 = arith.constant 0 : index
    %51 = vector.load %arg10[%c0_30, %c0_31] : memref<128x128xf32, #tpu.memory_space<vmem>>, vector<128x128xf32>
    %cst_32 = arith.constant dense<0.000000e+00> : vector<1x128xf32>
    %52 = tpu.matmul %36, %51, %cst_32 {dimension_numbers = #tpu.dot_dimension_numbers<[1], [0], [0], [1], [0, 0, 1, 1], [], []>} : vector<1x128xf32>, vector<128x128xf32>, vector<1x128xf32> -> vector<1x128xf32>
    %53 = arith.addf %50, %52 : vector<1x128xf32>
    %c0_33 = arith.constant 0 : index
    %c0_34 = arith.constant 0 : index
    %54 = vector.load %arg11[%c0_33, %c0_34] : memref<1x128xf32, #tpu.memory_space<vmem>>, vector<1x128xf32>
    %55 = arith.addf %53, %54 : vector<1x128xf32>
    %cst_35 = arith.constant dense<0xFF800000> : vector<1xf32>
    %56 = vector.multi_reduction <maximumf>, %55, %cst_35 [1] : vector<1x128xf32> to vector<1xf32>
    %57 = vector.shape_cast %56 : vector<1xf32> to vector<1x1xf32>
    %58 = vector.broadcast %57 : vector<1x1xf32> to vector<1x128xf32>
    %59 = arith.subf %55, %58 : vector<1x128xf32>
    %60 = math.exp %59 : vector<1x128xf32>
    %cst_36 = arith.constant dense<0.000000e+00> : vector<1xf32>
    %61 = vector.multi_reduction <add>, %60, %cst_36 [1] : vector<1x128xf32> to vector<1xf32>
    %62 = vector.shape_cast %61 : vector<1xf32> to vector<1x1xf32>
    %63 = math.log %62 : vector<1x1xf32>
    %64 = arith.addf %57, %63 : vector<1x1xf32>
    %65 = vector.broadcast %64 : vector<1x1xf32> to vector<1x128xf32>
    %66 = arith.subf %55, %65 : vector<1x128xf32>
    %c0_37 = arith.constant 0 : index
    %c0_38 = arith.constant 0 : index
    %67 = vector.load %arg7[%c0_37, %c0_38] : memref<1x128xf32, #tpu.memory_space<vmem>>, vector<1x128xf32>
    tpu.vector_store %arg7[%c0_37, %c0_38], %66 {strides = array<i32>} : memref<1x128xf32, #tpu.memory_space<vmem>>, vector<1x128xf32>,
    %c0_39 = arith.constant 0 : index
    %c0_40 = arith.constant 0 : index
    %68 = vector.load %arg8[%c0_39, %c0_40] : memref<1x128xf32, #tpu.memory_space<vmem>>, vector<1x128xf32>
    tpu.vector_store %arg8[%c0_39, %c0_40], %41 {strides = array<i32>} : memref<1x128xf32, #tpu.memory_space<vmem>>, vector<1x128xf32>,
    return
  }
}

</mosaic_0001>

<bundles_post_ra>
// kernel: encoder_forward.1
= control target key start
LH: loop header
LB: loop body
LE: loop exit
PB: predicated region body
PF: predicated region fallthrough
CT: control target
= control target key end

     0   :  { %14 = vsyncpa [#allocation7], 0  ;;  %s1780_s0 = inlined_call_operand.hbm [shape: f32[8,16], index: 0, kind: input, shape index: {}]   ;;  %s1781_s1 = inlined_call_operand.vmem [shape: f32[16,128], index: 1, kind: input, shape index: {}]   ;;  %s1782_s2 = inlined_call_operand.vmem [shape: f32[1,128], index: 2, kind: input, shape index: {}]   ;;  %s1783_s3 = inlined_call_operand.hbm [shape: f32[4,128,128], index: 3, kind: input, shape index: {}]   ;;  %s1784_s4 = inlined_call_operand.hbm [shape: f32[16,128], index: 4, kind: input, shape index: {}]   ;;  %s1785_s5 = inlined_call_operand.hbm [shape: f32[128,128], index: 5, kind: input, shape index: {}]   ;;  %s1786_s6 = inlined_call_operand.vmem [shape: f32[1,128], index: 6, kind: input, shape index: {}]   ;;  %s1787_s7 = inlined_call_operand.hbm [shape: f32[1,128], index: 7, kind: output, shape index: {0}]   ;;  %s1788_s8 = inlined_call_operand.hbm [shape: f32[1,128], index: 8, kind: output, shape index: {1}]  }
   0x1   :  { %15 = vsyncpa [#allocation10], 0 }
   0x2   :  { %16 = vsyncpa [#allocation8], 0 }
   0x3   :  { %17 = vsyncpa [#allocation13], 0  ;;  %s1525_s27 = smov [#allocation6]   ;;  %s1526_s29 = smov [#allocation9]  }
   0x4   :  { %s24_s28 = sshll.u32 %s1525_s27, 4  ;;  %s37_s30 = sshll.u32 %s1526_s29, 4  ;;  %s25_s28 = int_to_ptr.vmem [resolvable:$true] %s24_s28  ;;  %s1581_s30 = int_to_ptr.vmem [resolvable:$true] %s37_s30 }
   0x5   :  { %s1379_s11 = scalar_lea.hbm %s1780_s0, 128 }
   0x6   :  { %p1380_p0 = scmp.ne.s32.totalorder %s1780_s0, %s1379_s11  ;;  %p1383_p1 = scmp.lt.u32.totalorder %s1379_s11, %s1780_s0 }
   0x8   :  { %p1385_p2 = pnand %p1383_p1, %p1380_p0 }
   0xa   :  { %1388 = shalt.err (!%p1385_p2)
}
   0xb   :  { %s1389_s16 = scalar_lea.vmem %s25_s28, 128  ;;  %p1394_p4 = scmp.lt.s32.totalorder %s25_s28, %s25_s28 }
   0xc   :  { %p1390_p3 = scmp.ne.s32.totalorder %s25_s28, %s1389_s16  ;;  %p1395_p5 = scmp.lt.s32.totalorder %s1389_s16, %s1389_s16 }
   0xe   :  { %p1396_p6 = por %p1395_p5, %p1394_p4 }
  0x10   :  { %p1397_p7 = pnand %p1396_p6, %p1390_p3 }
  0x12   :  { %1400 = shalt.err (!%p1397_p7)
}
  0x13   :  { %27 = dma.hbm_to_vmem [thread:$0]  %s1780_s0, 128, %s25_s28, [#allocation7]  }
  0x14   :  { %s1401_s21 = scalar_lea.hbm %s1783_s3, 8192 }
  0x15   :  { %p1402_p8 = scmp.ne.s32.totalorder %s1783_s3, %s1401_s21  ;;  %p1405_p9 = scmp.lt.u32.totalorder %s1401_s21, %s1783_s3 }
  0x17   :  { %p1407_p10 = pnand %p1405_p9, %p1402_p8 }
  0x19   :  { %1410 = shalt.err (!%p1407_p10)
}
  0x1a   :  { %s1411_s26 = scalar_lea.vmem %s1581_s30, 8192  ;;  %p1416_p12 = scmp.lt.s32.totalorder %s1581_s30, %s1581_s30 }
  0x1b   :  { %p1412_p11 = scmp.ne.s32.totalorder %s1581_s30, %s1411_s26  ;;  %p1417_p13 = scmp.lt.s32.totalorder %s1411_s26, %s1411_s26 }
  0x1d   :  { %p1418_p0 = por %p1417_p13, %p1416_p12 }
  0x1f   :  { %p1419_p1 = pnand %p1418_p0, %p1412_p11 }
  0x21   :  { %1422 = shalt.err (!%p1419_p1)
}
  0x22   :  { %s1527_s0 = smov 128   ;;  %s1528_s27 = smov 8  }
  0x23   :  { %43 = dma.hbm_to_vmem [thread:$0]  %s1783_s3, 8192, %s1581_s30, [#allocation10], %s1527_s0, %s1527_s0, %s1528_s27  }
  0x24   :  { %1511 = dma.done.wait [#allocation7], 128  }
  0x25   :  { %1512 = vsyncadd [#allocation7], 4294967168 }
  0x26   :  { %1513 = dma.done.wait [#allocation10], 8192  }
  0x27   :  { %1514 = vsyncadd [#allocation10], 4294959104  ;;  %s1529_s9 = smov [#allocation2]   ;;  %s1530_s11 = smov [#allocation3]  }
  0x28   :  { %s57_s10 = sshll.u32 %s1529_s9, 4  ;;  %s69_s12 = sshll.u32 %s1530_s11, 4  ;;  %s58_s10 = int_to_ptr.vmem [resolvable:$true] %s57_s10  ;;  %s70_s12 = int_to_ptr.vmem [resolvable:$true] %s69_s12 }
  0x29   :  { %s1423_s15 = scalar_lea.hbm %s1784_s4, 256 }
  0x2a   :  { %p1424_p2 = scmp.ne.s32.totalorder %s1784_s4, %s1423_s15  ;;  %p1427_p3 = scmp.lt.u32.totalorder %s1423_s15, %s1784_s4 }
  0x2c   :  { %p1429_p4 = pnand %p1427_p3, %p1424_p2 }
  0x2e   :  { %1432 = shalt.err (!%p1429_p4)  }
  0x2f   :  { %s1433_s30 = scalar_lea.vmem %s58_s10, 256  ;;  %p1438_p6 = scmp.lt.s32.totalorder %s58_s10, %s58_s10 }
  0x30   :  { %p1434_p5 = scmp.ne.s32.totalorder %s58_s10, %s1433_s30  ;;  %p1439_p7 = scmp.lt.s32.totalorder %s1433_s30, %s1433_s30 }
  0x32   :  { %p1440_p8 = por %p1439_p7, %p1438_p6 }
  0x34   :  { %p1441_p9 = pnand %p1440_p8, %p1434_p5 }
  0x36   :  { %1444 = shalt.err (!%p1441_p9)  }
  0x37   :  { %60 = dma.hbm_to_vmem [thread:$0]  %s1784_s4, 256, %s58_s10, [#allocation5] }
  0x38   :  { %s1445_s23 = scalar_lea.hbm %s1785_s5, 2048 }
  0x39   :  { %p1446_p10 = scmp.ne.s32.totalorder %s1785_s5, %s1445_s23  ;;  %p1449_p11 = scmp.lt.u32.totalorder %s1445_s23, %s1785_s5 }
  0x3b   :  { %p1451_p12 = pnand %p1449_p11, %p1446_p10 }
  0x3d   :  { %1454 = shalt.err (!%p1451_p12)  }
  0x3e   :  { %s1455_s27 = scalar_lea.vmem %s70_s12, 2048  ;;  %p1460_p0 = scmp.lt.s32.totalorder %s70_s12, %s70_s12 }
  0x3f   :  { %p1456_p13 = scmp.ne.s32.totalorder %s70_s12, %s1455_s27  ;;  %p1461_p1 = scmp.lt.s32.totalorder %s1455_s27, %s1455_s27 }
  0x41   :  { %p1462_p2 = por %p1461_p1, %p1460_p0 }
  0x43   :  { %p1463_p3 = pnand %p1462_p2, %p1456_p13 }
  0x45   :  { %1466 = shalt.err (!%p1463_p3)  }
  0x46   :  { %72 = dma.hbm_to_vmem [thread:$0]  %s1785_s5, 2048, %s70_s12, [#allocation5 + $0x1]  ;;  %v91_v0 = vld [vmem:[%s1786_s6] sm:$0x1] }
  0x47   :  { %92 = vst [vmem:[#allocation4] sm:$0x1] %v91_v0 }
  0x48   :  { %117 = vsyncadd [#allocation5 + $0x2], 16  ;;  %v119_v1 = vld [vmem:[%s1781_s1] sm:$0xff]  ;;  %v120_v2 = vld [vmem:[%s1781_s1 + $0x8] sm:$0xff]  ;;  %v1531_v3 = vmov 0.0|0.0   ;;  %vm1532_vm0 = vmmov 0  }
  0x49   :  { %1214 = vmatprep.subr.bf16.mxu0 %v1531_v3  ;;  %v1215_v4 = vpack.c.bf16 %v120_v2, %v119_v1  ;;  %1217 = vmatprep.subr.bf16.mxu1 %v1531_v3  ;;  %v202_v5 = vld [vmem:[#allocation9] sm:$0xff]  ;;  %v203_v6 = vld [vmem:[#allocation9 + $0x8] sm:$0xff]  ;;  %v1533_v7 = vmov 0.0   ;;  %v204_v11 = vld [vmem:[#allocation9 + $0x10] sm:$0xff]  ;;  %vm128_vm1 = vcmask 130048  }
  0x4a   :  { %994 = vmatprep.mubr.msk.f32.mxu0 %vm1532_vm0, %v1533_v7  ;;  %v1649_v8 = vpack.c.bf16 %v203_v6, %v202_v5  ;;  %v289_v9 = vld [vmem:[#allocation9 + $0x80] sm:$0xff]  ;;  %v290_v10 = vld [vmem:[#allocation9 + $0x88] sm:$0xff]  ;;  %1029 = vmatprep.mubr.msk.f32.mxu1 %vm1532_vm0, %v1533_v7  ;;  %v118_v12 = vld [vmem:[#allocation6] sm:$0xff] }
  0x4b   :  { %1216 = vmatpush3.bf16.msra.mxu0 %v1215_v4  ;;  %v1242_v13 = vpack.c.bf16 %v290_v10, %v289_v9  ;;  %v205_v14 = vld [vmem:[#allocation9 + $0x18] sm:$0xff]  ;;  %v291_v16 = vld [vmem:[#allocation9 + $0x90] sm:$0xff]  ;;  %v206_v18 = vld [vmem:[#allocation9 + $0x20] sm:$0xff] }
  0x4c   :  { %1219 = vmatpush3.bf16.msra.mxu1 %v1649_v8  ;;  %1241 = vmatprep.subr.bf16.mxu0 %v1531_v3  ;;  %v1655_v15 = vpack.c.bf16 %v205_v14, %v204_v11  ;;  %v292_v17 = vld [vmem:[#allocation9 + $0x98] sm:$0xff]  ;;  %v207_v19 = vld [vmem:[#allocation9 + $0x28] sm:$0xff]  ;;  %v293_v22 = vld [vmem:[#allocation9 + $0xa0] sm:$0xff] }
  0x4d   :  { %1220 = vmatprep.subr.bf16.mxu1 %v1531_v3  ;;  %v1245_v20 = vpack.c.bf16 %v292_v17, %v291_v16  ;;  %v1663_v21 = vpack.c.bf16 %v207_v19, %v206_v18  ;;  %v294_v23 = vld [vmem:[#allocation9 + $0xa8] sm:$0xff]  ;;  %v208_v24 = vld [vmem:[#allocation9 + $0x30] sm:$0xff]  ;;  %v209_v25 = vld [vmem:[#allocation9 + $0x38] sm:$0xff] }
  0x4e   :  { %995 = vmatmul.mubr.msk.f32.vlgmr.msra.gmra.mrb[0].mxu0 %vm128_vm1, %v118_v12  ;;  %v1248_v26 = vpack.c.bf16 %v294_v23, %v293_v22  ;;  %v1668_v27 = vpack.c.bf16 %v209_v25, %v208_v24  ;;  %v295_v28 = vld [vmem:[#allocation9 + $0xb0] sm:$0xff]  ;;  %v296_v29 = vld [vmem:[#allocation9 + $0xb8] sm:$0xff]  ;;  %v210_v30 = vld [vmem:[#allocation9 + $0x40] sm:$0xff] }
  0x4f   :  { %1243 = vmatpush3.bf16.msra.mxu0 %v1242_v13  ;;  %1064 = vmatprep.mubr.msk.f32.mxu0 %vm1532_vm0, %v1533_v7  ;;  %v211_v31 = vld [vmem:[#allocation9 + $0x48] sm:$0xff]  ;;  %v1251_v32 = vpack.c.bf16 %v296_v29, %v295_v28  ;;  %v297_v34 = vld [vmem:[#allocation9 + $0xc0] sm:$0xff]  ;;  %v212_v36 = vld [vmem:[#allocation9 + $0x50] sm:$0xff] }
  0x50   :  { %1222 = vmatpush3.bf16.msra.mxu1 %v1655_v15  ;;  %1244 = vmatprep.subr.bf16.mxu0 %v1531_v3  ;;  %v1673_v33 = vpack.c.bf16 %v211_v31, %v210_v30  ;;  %v298_v35 = vld [vmem:[#allocation9 + $0xc8] sm:$0xff]  ;;  %v213_v37 = vld [vmem:[#allocation9 + $0x58] sm:$0xff]  ;;  %v299_v40 = vld [vmem:[#allocation9 + $0xd0] sm:$0xff] }
  0x51   :  { %1223 = vmatprep.subr.bf16.mxu1 %v1531_v3  ;;  %v1254_v38 = vpack.c.bf16 %v298_v35, %v297_v34  ;;  %v1678_v39 = vpack.c.bf16 %v213_v37, %v212_v36  ;;  %v300_v41 = vld [vmem:[#allocation9 + $0xd8] sm:$0xff]  ;;  %v214_v42 = vld [vmem:[#allocation9 + $0x60] sm:$0xff]  ;;  %v215_v43 = vld [vmem:[#allocation9 + $0x68] sm:$0xff] }
  0x52   :  { %v1257_v44 = vpack.c.bf16 %v300_v41, %v299_v40  ;;  %v1683_v45 = vpack.c.bf16 %v215_v43, %v214_v42  ;;  %v301_v46 = vld [vmem:[#allocation9 + $0xe0] sm:$0xff]  ;;  %v302_v47 = vld [vmem:[#allocation9 + $0xe8] sm:$0xff]  ;;  %v216_v48 = vld [vmem:[#allocation9 + $0x70] sm:$0xff] }
  0x53   :  { %1246 = vmatpush3.bf16.msra.mxu0 %v1245_v20  ;;  %v217_v49 = vld [vmem:[#allocation9 + $0x78] sm:$0xff]  ;;  %v1260_v50 = vpack.c.bf16 %v302_v47, %v301_v46  ;;  %v303_v52 = vld [vmem:[#allocation9 + $0xf0] sm:$0xff]  ;;  %v376_v55 = vld [vmem:[#allocation9 + $0x100] sm:$0xff] }
  0x54   :  { %1225 = vmatpush3.bf16.msra.mxu1 %v1663_v21  ;;  %1247 = vmatprep.subr.bf16.mxu0 %v1531_v3  ;;  %v1688_v51 = vpack.c.bf16 %v217_v49, %v216_v48  ;;  %v304_v53 = vld [vmem:[#allocation9 + $0xf8] sm:$0xff]  ;;  %v377_v56 = vld [vmem:[#allocation9 + $0x108] sm:$0xff]  ;;  %v876_v57 = vld [vmem:[%s1782_s2] ss:$0 sm:$0xff] }
  0x55   :  { %1226 = vmatprep.subr.bf16.mxu1 %v1531_v3  ;;  %v1263_v54 = vpack.c.bf16 %v304_v53, %v303_v52  ;;  %v1266_v59 = vpack.c.bf16 %v377_v56, %v376_v55  ;;  %v378_v62 = vld [vmem:[#allocation9 + $0x110] sm:$0xff]  ;;  %v379_v63 = vld [vmem:[#allocation9 + $0x118] sm:$0xff]  ;;  %v380_v1 = vld [vmem:[#allocation9 + $0x120] sm:$0xff] }
  0x56   :  { %v1269_v0 = vpack.c.bf16 %v379_v63, %v378_v62  ;;  %v381_v2 = vld [vmem:[#allocation9 + $0x128] sm:$0xff]  ;;  %v382_v5 = vld [vmem:[#allocation9 + $0x130] sm:$0xff]  ;;  %v383_v6 = vld [vmem:[#allocation9 + $0x138] sm:$0xff] }
  0x57   :  { %1249 = vmatpush3.bf16.msra.mxu0 %v1248_v26  ;;  %v1272_v4 = vpack.c.bf16 %v381_v2, %v380_v1  ;;  %v1275_v9 = vpack.c.bf16 %v383_v6, %v382_v5  ;;  %v384_v10 = vld [vmem:[#allocation9 + $0x140] sm:$0xff]  ;;  %v385_v11 = vld [vmem:[#allocation9 + $0x148] sm:$0xff]  ;;  %v386_v13 = vld [vmem:[#allocation9 + $0x150] sm:$0xff] }
  0x58   :  { %1228 = vmatpush3.bf16.msra.mxu1 %v1668_v27  ;;  %1250 = vmatprep.subr.bf16.mxu0 %v1531_v3  ;;  %v1278_v12 = vpack.c.bf16 %v385_v11, %v384_v10  ;;  %v387_v14 = vld [vmem:[#allocation9 + $0x158] sm:$0xff]  ;;  %v388_v17 = vld [vmem:[#allocation9 + $0x160] sm:$0xff]  ;;  %v389_v18 = vld [vmem:[#allocation9 + $0x168] sm:$0xff] }
  0x59   :  { %1229 = vmatprep.subr.bf16.mxu1 %v1531_v3  ;;  %v1281_v16 = vpack.c.bf16 %v387_v14, %v386_v13  ;;  %v1284_v19 = vpack.c.bf16 %v389_v18, %v388_v17  ;;  %v390_v20 = vld [vmem:[#allocation9 + $0x170] sm:$0xff]  ;;  %v391_v22 = vld [vmem:[#allocation9 + $0x178] sm:$0xff] }
  0x5a   :  { %v1287_v23 = vpack.c.bf16 %v391_v22, %v390_v20  ;;  %v627_v41 = vld [vmem:[#allocation6 + $0x7] sm:$0x1] }
  0x5b   :  { %1252 = vmatpush3.bf16.msra.mxu0 %v1251_v32 }
  0x5c   :  { %1231 = vmatpush3.bf16.msra.mxu1 %v1673_v33  ;;  %1253 = vmatprep.subr.bf16.mxu0 %v1531_v3 }
  0x5d   :  { %1232 = vmatprep.subr.bf16.mxu1 %v1531_v3 }
  0x5f   :  { %1255 = vmatpush3.bf16.msra.mxu0 %v1254_v38 }
  0x60   :  { %1234 = vmatpush3.bf16.msra.mxu1 %v1678_v39  ;;  %1256 = vmatprep.subr.bf16.mxu0 %v1531_v3 }
  0x61   :  { %1235 = vmatprep.subr.bf16.mxu1 %v1531_v3 }
  0x63   :  { %1258 = vmatpush3.bf16.msra.mxu0 %v1257_v44 }
  0x64   :  { %1237 = vmatpush3.bf16.msra.mxu1 %v1683_v45  ;;  %1259 = vmatprep.subr.bf16.mxu0 %v1531_v3 }
  0x65   :  { %1238 = vmatprep.subr.bf16.mxu1 %v1531_v3 }
  0x67   :  { %1261 = vmatpush3.bf16.msra.mxu0 %v1260_v50 }
  0x68   :  { %1240 = vmatpush3.bf16.msra.mxu1 %v1688_v51  ;;  %1262 = vmatprep.subr.bf16.mxu0 %v1531_v3 }
  0x69   :  { %1265 = vmatprep.subr.bf16.mxu1 %v1531_v3 }
  0x6b   :  { %1264 = vmatpush3.bf16.msra.mxu0 %v1263_v54 }
  0x6c   :  { %1289 = vmatprep.subr.bf16.mxu0 %v1531_v3 }
 0x121   :  { %v198_v58 = vpop.f32.mrb[0].mxu0 }
 0x122   :  { %v1698_v60 = vadd.f32 %v876_v57, %v198_v58  ;;  %v996_v61 = vpop.f32.mrb[1].mxu0 }
 0x124   :  { %1030 = vmatmul.mubr.f32.vlgmr.msra.gmra.mrb[0].mxu1 %v1698_v60  ;;  %1065 = vmatmul.mubr.f32.vlgmr.msra.gmra.mrb[2].mxu0 %v1698_v60  ;;  %v477_v35 = vrot.slane %v1698_v60, 2 }
 0x125   :  { %1267 = vmatpush3.bf16.msra.mxu1 %v1266_v59  ;;  %1099 = vmatprep.mubr.msk.f32.mxu1 %vm1532_vm0, %v1533_v7 }
 0x126   :  { %1268 = vmatprep.subr.bf16.mxu1 %v1531_v3  ;;  %1291 = vmatpush3.bf16.msra.mxu0 %v1266_v59 }
 0x127   :  { %1292 = vmatprep.subr.bf16.mxu0 %v1531_v3  ;;  %1134 = vmatprep.mubr.msk.f32.mxu0 %vm1532_vm0, %v1533_v7 }
 0x129   :  { %1270 = vmatpush3.bf16.msra.mxu1 %v1269_v0 }
 0x12a   :  { %1271 = vmatprep.subr.bf16.mxu1 %v1531_v3  ;;  %1294 = vmatpush3.bf16.msra.mxu0 %v1269_v0 }
 0x12b   :  { %1295 = vmatprep.subr.bf16.mxu0 %v1531_v3 }
 0x12d   :  { %1273 = vmatpush3.bf16.msra.mxu1 %v1272_v4 }
 0x12e   :  { %1274 = vmatprep.subr.bf16.mxu1 %v1531_v3  ;;  %1297 = vmatpush3.bf16.msra.mxu0 %v1272_v4 }
 0x12f   :  { %1298 = vmatprep.subr.bf16.mxu0 %v1531_v3 }
 0x131   :  { %1276 = vmatpush3.bf16.msra.mxu1 %v1275_v9 }
 0x132   :  { %1277 = vmatprep.subr.bf16.mxu1 %v1531_v3  ;;  %1300 = vmatpush3.bf16.msra.mxu0 %v1275_v9 }
 0x133   :  { %1301 = vmatprep.subr.bf16.mxu0 %v1531_v3 }
 0x135   :  { %1279 = vmatpush3.bf16.msra.mxu1 %v1278_v12 }
 0x136   :  { %1280 = vmatprep.subr.bf16.mxu1 %v1531_v3  ;;  %1303 = vmatpush3.bf16.msra.mxu0 %v1278_v12 }
 0x137   :  { %1304 = vmatprep.subr.bf16.mxu0 %v1531_v3 }
 0x139   :  { %1282 = vmatpush3.bf16.msra.mxu1 %v1281_v16 }
 0x13a   :  { %1283 = vmatprep.subr.bf16.mxu1 %v1531_v3  ;;  %1306 = vmatpush3.bf16.msra.mxu0 %v1281_v16 }
 0x13b   :  { %1307 = vmatprep.subr.bf16.mxu0 %v1531_v3 }
 0x13d   :  { %1285 = vmatpush3.bf16.msra.mxu1 %v1284_v19 }
 0x13e   :  { %1286 = vmatprep.subr.bf16.mxu1 %v1531_v3  ;;  %1309 = vmatpush3.bf16.msra.mxu0 %v1284_v19 }
 0x13f   :  { %1310 = vmatprep.subr.bf16.mxu0 %v1531_v3 }
 0x141   :  { %1288 = vmatpush3.bf16.msra.mxu1 %v1287_v23 }
 0x142   :  { %1312 = vmatpush3.bf16.msra.mxu0 %v1287_v23  ;;  %1313 = vmatprep.subr.bf16.mxu1 %v1531_v3 }
 0x144   :  { %1100 = vmatmul.mubr.f32.vlgmr.msra.gmra.mrb[2].mxu1 %v1698_v60 }
 0x145   :  { %1315 = vmatpush3.bf16.msra.mxu1 %v1649_v8  ;;  %1169 = vmatprep.mubr.msk.f32.mxu1 %vm1532_vm0, %v1533_v7 }
 0x146   :  { %1316 = vmatprep.subr.bf16.mxu1 %v1531_v3 }
 0x149   :  { %1318 = vmatpush3.bf16.msra.mxu1 %v1655_v15 }
 0x14a   :  { %1319 = vmatprep.subr.bf16.mxu1 %v1531_v3 }
 0x14d   :  { %1321 = vmatpush3.bf16.msra.mxu1 %v1663_v21 }
 0x14e   :  { %1322 = vmatprep.subr.bf16.mxu1 %v1531_v3 }
 0x151   :  { %1324 = vmatpush3.bf16.msra.mxu1 %v1668_v27 }
 0x152   :  { %1325 = vmatprep.subr.bf16.mxu1 %v1531_v3 }
 0x155   :  { %1327 = vmatpush3.bf16.msra.mxu1 %v1673_v33  ;;  %v471_v33 = vrot.slane %v1698_v60, 3 }
 0x156   :  { %1328 = vmatprep.subr.bf16.mxu1 %v1531_v3 }
 0x159   :  { %1330 = vmatpush3.bf16.msra.mxu1 %v1678_v39 }
 0x15a   :  { %1331 = vmatprep.subr.bf16.mxu1 %v1531_v3 }
 0x15d   :  { %1333 = vmatpush3.bf16.msra.mxu1 %v1683_v45 }
 0x15e   :  { %1334 = vmatprep.subr.bf16.mxu1 %v1531_v3 }
 0x161   :  { %1336 = vmatpush3.bf16.msra.mxu1 %v1688_v51 }
 0x1f7   :  { %v284_v8 = vpop.f32.mrb[0].mxu1  ;;  %v371_v15 = vpop.f32.mrb[2].mxu0 }
 0x1f8   :  { %v474_v21 = vrot.slane %v284_v8, 1  ;;  %v1031_v24 = vpop.f32.mrb[1].mxu1  ;;  %v1066_v25 = vpop.f32.mrb[3].mxu0  ;;  %v463_v27 = vrot.slane %v371_v15, 1  ;;  %v467_v29 = vrot.slane %v284_v8, 2 }
 0x1fa   :  { %v476_v26 = vadd.f32 %v474_v21, %v371_v15 }
 0x1fc   :  { %v479_v36 = vadd.f32 %v477_v35, %v476_v26 }
 0x1fe   :  { %v481_v37 = vrot.slane %v479_v36, 4 }
 0x217   :  { %v458_v28 = vpop.f32.mrb[2].mxu1 }
 0x218   :  { %v465_v30 = vadd.f32 %v463_v27, %v458_v28  ;;  %v1101_v31 = vpop.f32.mrb[3].mxu1 }
 0x21a   :  { %v469_v32 = vadd.f32 %v467_v29, %v465_v30 }
 0x21c   :  { %v473_v34 = vadd.f32 %v471_v33, %v469_v32 }
 0x21e   :  { %1135 = vmatmul.mubr.f32.vlgmr.msra.gmra.mrb[4].mxu0 %v473_v34 }
 0x2f1   :  { %v549_v38 = vpop.f32.mrb[4].mxu0 }
 0x2f2   :  { %v550_v39 = vadd.f32 %v549_v38, %v481_v37  ;;  %v1136_v40 = vpop.f32.mrb[5].mxu0 }
 0x2f4   :  { %1170 = vmatmul.mubr.f32.vlgmr.msra.gmra.mrb[4].mxu1 %v550_v39 }
 0x3c7   :  { %v619_v42 = vpop.f32.mrb[4].mxu1 }
 0x3c8   :  { %v624_v43 = vrot.slane %v619_v42, 1  ;;  %v1171_v44 = vpop.f32.mrb[5].mxu1 }
 0x3ca   :  { %v626_v45 = vadd.f32 %v624_v43, %v1698_v60 }
 0x3cb   :  { %1515 = dma.done.wait [#allocation5], 256 }
 0x3cc   :  { %1516 = vsyncadd [#allocation5], 4294967040 }
 0x3cd   :  { %1517 = dma.done.wait [#allocation5 + $0x1], 2048 }
 0x3ce   :  { %1518 = vsyncadd [#allocation5 + $0x1], 4294965248 }
 0x3cf   :  { %1519 = dma.done.wait [#allocation5 + $0x2], 16 }
 0x3d0   :  { %1520 = vsyncadd [#allocation5 + $0x2], 4294967280  ;;  %1337 = vmatprep.subr.bf16.mxu0 %v1531_v3  ;;  %1361 = vmatprep.subr.bf16.mxu1 %v1531_v3  ;;  %815 = vst [vmem:[#allocation12 - $0x7] sm:$0x80] %v626_v45  ;;  %v639_v46 = vld [vmem:[#allocation3] sm:$0xff]  ;;  %v640_v47 = vld [vmem:[#allocation3 + $0x8] sm:$0xff] }
 0x3d1   :  { %1211 = vmatprep.mubr.msk.f32.mxu1 %vm1532_vm0, %v1533_v7  ;;  %1204 = vmatprep.mubr.msk.f32.mxu0 %vm1532_vm0, %v1533_v7  ;;  %v641_v48 = vld [vmem:[#allocation3 + $0x10] sm:$0xff]  ;;  %v1338_v49 = vpack.c.bf16 %v640_v47, %v639_v46  ;;  %v642_v50 = vld [vmem:[#allocation3 + $0x18] sm:$0xff]  ;;  %v643_v52 = vld [vmem:[#allocation3 + $0x20] sm:$0xff]  ;;  %vm800_vm2 = vcmask 1040384   ;;  %s1534_s2 = smov [#allocation12]  }
 0x3d2   :  { %v1341_v51 = vpack.c.bf16 %v642_v50, %v641_v48  ;;  %v644_v53 = vld [vmem:[#allocation3 + $0x28] sm:$0xff]  ;;  %v637_v54 = vld [vmem:[#allocation2] sm:$0xff]  ;;  %v638_v55 = vld [vmem:[#allocation2 + $0x8] sm:$0xff]  ;;  %s832_s6 = sshll.u32 %s1534_s2, 4  ;;  %s833_s6 = int_to_ptr.vmem [resolvable:$true] %s832_s6 }
 0x3d3   :  { %1339 = vmatpush3.bf16.msra.mxu0 %v1338_v49  ;;  %v1362_v56 = vpack.c.bf16 %v638_v55, %v637_v54  ;;  %v1344_v57 = vpack.c.bf16 %v644_v53, %v643_v52  ;;  %v645_v58 = vld [vmem:[#allocation3 + $0x30] sm:$0xff]  ;;  %v646_v7 = vld [vmem:[#allocation3 + $0x38] sm:$0xff]  ;;  %v647_v60 = vld [vmem:[#allocation3 + $0x40] sm:$0xff]  ;;  %s1467_s12 = scalar_lea.vmem %s833_s6, 16  ;;  %s1471_s15 = scalar_lea.vmem %s833_s6, 32 }
 0x3d4   :  { %1340 = vmatprep.subr.bf16.mxu0 %v1531_v3  ;;  %v1347_v59 = vpack.c.bf16 %v646_v7, %v645_v58  ;;  %v648_v61 = vld [vmem:[#allocation3 + $0x48] sm:$0xff]  ;;  %v649_v63 = vld [vmem:[#allocation3 + $0x50] sm:$0xff]  ;;  %v650_v0 = vld [vmem:[#allocation3 + $0x58] sm:$0xff]  ;;  %p1468_p4 = scmp.ne.s32.totalorder %s833_s6, %s1467_s12  ;;  %p1472_p5 = scmp.lt.s32.totalorder %s833_s6, %s833_s6 }
 0x3d5   :  { %1363 = vmatpush3.bf16.msra.mxu1 %v1362_v56  ;;  %v1350_v62 = vpack.c.bf16 %v648_v61, %v647_v60  ;;  %v1353_v1 = vpack.c.bf16 %v650_v0, %v649_v63  ;;  %v651_v2 = vld [vmem:[#allocation3 + $0x60] sm:$0xff]  ;;  %v652_v4 = vld [vmem:[#allocation3 + $0x68] sm:$0xff]  ;;  %v653_v6 = vld [vmem:[#allocation3 + $0x70] sm:$0xff]  ;;  %p1473_p6 = scmp.lt.s32.totalorder %s1471_s15, %s1467_s12 }
 0x3d6   :  { %v1356_v5 = vpack.c.bf16 %v652_v4, %v651_v2  ;;  %v654_v9 = vld [vmem:[#allocation3 + $0x78] sm:$0xff]  ;;  %v798_v14 = vld [vmem:[#allocation4] sm:$0x1] }
 0x3d7   :  { %1342 = vmatpush3.bf16.msra.mxu0 %v1341_v51  ;;  %v1359_v10 = vpack.c.bf16 %v654_v9, %v653_v6  ;;  %p1474_p7 = por %p1473_p6, %p1472_p5 }
 0x3d8   :  { %1343 = vmatprep.subr.bf16.mxu0 %v1531_v3  ;;  %1212 = vmatmul.mubr.msk.f32.vlgmr.msra.gmra.mrb[6].mxu1 %vm128_vm1, %v627_v41 }
 0x3d9   :  { %p1475_p8 = pnand %p1474_p7, %p1468_p4 }
 0x3db   :  { %1345 = vmatpush3.bf16.msra.mxu0 %v1344_v57 }
 0x3dc   :  { %1346 = vmatprep.subr.bf16.mxu0 %v1531_v3 }
 0x3df   :  { %1348 = vmatpush3.bf16.msra.mxu0 %v1347_v59 }
 0x3e0   :  { %1349 = vmatprep.subr.bf16.mxu0 %v1531_v3 }
 0x3e3   :  { %1351 = vmatpush3.bf16.msra.mxu0 %v1350_v62 }
 0x3e4   :  { %1352 = vmatprep.subr.bf16.mxu0 %v1531_v3 }
 0x3e7   :  { %1354 = vmatpush3.bf16.msra.mxu0 %v1353_v1 }
 0x3e8   :  { %1355 = vmatprep.subr.bf16.mxu0 %v1531_v3 }
 0x3eb   :  { %1357 = vmatpush3.bf16.msra.mxu0 %v1356_v5 }
 0x3ec   :  { %1358 = vmatprep.subr.bf16.mxu0 %v1531_v3 }
 0x3ef   :  { %1360 = vmatpush3.bf16.msra.mxu0 %v1359_v10 }
 0x3f2   :  { %1205 = vmatmul.mubr.f32.vlgmr.msra.gmra.mrb[6].mxu0 %v550_v39 }
 0x4ab   :  { %v794_v11 = vpop.f32.mrb[6].mxu1 }
 0x4ac   :  { %v1213_v12 = vpop.f32.mrb[7].mxu1 }
 0x4c5   :  { %v721_v13 = vpop.f32.mrb[6].mxu0 }
 0x4c6   :  { %v795_v16 = vadd.f32 %v794_v11, %v721_v13  ;;  %v1206_v17 = vpop.f32.mrb[7].mxu0 }
 0x4c8   :  { %v799_v18 = vadd.f32 %v798_v14, %v795_v16 }
 0x4ca   :  { %v801_v19 = vsel %vm800_vm2, %v799_v18, -inf }
 0x4cb   :  { %802 = vmax.xlane.f32.xlu0 %v801_v19 }
 0x558   :  { %v803_v20 = vpop.xlane.xlu0 %802 }
 0x559   :  { %v804_v22 = vsub.f32 %v799_v18, %v803_v20 }
 0x55b   :  { %v805_v23 = vmul.f32 1.442695, %v804_v22 }
 0x55d   :  { %1375 = vpow2.f32 %v805_v23 }
 0x567   :  { %v1376_v8 = vpop.eup %1375 }
 0x568   :  { %v807_v15 = vsel %vm800_vm2, %v1376_v8, 0.0 }
 0x569   :  { %808 = vadd.xlane.f32.xlu0 %v807_v15 }
 0x56a   :  { %1478 = shalt.err (!%p1475_p8)
}
 0x56b   :  { %s1479_s18 = scalar_lea.hbm %s1788_s8, 16 }
 0x56c   :  { %p1480_p9 = scmp.ne.s32.totalorder %s1788_s8, %s1479_s18  ;;  %p1483_p10 = scmp.lt.u32.totalorder %s1479_s18, %s1788_s8 }
 0x56e   :  { %p1485_p11 = pnand %p1483_p10, %p1480_p9 }
 0x570   :  { %1488 = shalt.err (!%p1485_p11)
}
 0x571   :  { %835 = dma.vmem_to_hbm [thread:$0]  %s833_s6, 16, %s1788_s8, [#allocation13]  }
 0x572   :  { %s1535_s23 = smov [#allocation11]  }
 0x573   :  { %s822_s24 = sshll.u32 %s1535_s23, 4  ;;  %s823_s24 = int_to_ptr.vmem [resolvable:$true] %s822_s24 }
 0x574   :  { %s1489_s25 = scalar_lea.vmem %s823_s24, 16  ;;  %s1493_s26 = scalar_lea.vmem %s823_s24, 32 }
 0x575   :  { %p1490_p12 = scmp.ne.s32.totalorder %s823_s24, %s1489_s25  ;;  %p1494_p13 = scmp.lt.s32.totalorder %s823_s24, %s823_s24 }
 0x576   :  { %p1495_p0 = scmp.lt.s32.totalorder %s1493_s26, %s1489_s25 }
 0x578   :  { %p1496_p1 = por %p1495_p0, %p1494_p13 }
 0x57a   :  { %p1497_p2 = pnand %p1496_p1, %p1490_p12 }
 0x5f6   :  { %v809_v3 = vpop.xlane.xlu0 %808 }
 0x5f7   :  { %1377 = vlog2.f32 %v809_v3 }
 0x601   :  { %v1378_v21 = vpop.eup %1377 }
 0x602   :  { %v811_v24 = vmul.f32 0.6931472, %v1378_v21 }
 0x604   :  { %v812_v25 = vadd.f32 %v811_v24, %v803_v20 }
 0x606   :  { %v813_v26 = vsub.f32 %v799_v18, %v812_v25 }
 0x608   :  { %814 = vst [vmem:[#allocation11] sm:$0x1] %v813_v26 }
 0x609   :  { %1500 = shalt.err (!%p1497_p2)
}
 0x60a   :  { %s1501_s27 = scalar_lea.hbm %s1787_s7, 16 }
 0x60b   :  { %p1502_p3 = scmp.ne.s32.totalorder %s1787_s7, %s1501_s27  ;;  %p1505_p4 = scmp.lt.u32.totalorder %s1501_s27, %s1787_s7 }
 0x60d   :  { %p1507_p5 = pnand %p1505_p4, %p1502_p3 }
 0x60f   :  { %1510 = shalt.err (!%p1507_p5)
}
 0x610   :  { %825 = dma.vmem_to_hbm [thread:$0]  %s823_s24, 16, %s1787_s7, [#allocation8]  }
 0x611   :  { %1521 = dma.done.wait [#allocation8], 16  }
 0x612   :  { %1522 = vsyncadd [#allocation8], 4294967280 }
 0x613   :  { %1523 = dma.done.wait [#allocation13], 16  }
 0x614   :  { %1524 = vsyncadd [#allocation13], 4294967280 }
 0x615   :  { %842 = vsyncpa [#allocation7], 1 }
 0x616   :  { %843 = vsyncpa [#allocation10], 1 }
 0x617   :  { %844 = vsyncpa [#allocation8], 1 }
 0x618   :  { %845 = vsyncpa [#allocation13], 1 }
 0x619   :  { %846 = vsyncmov [#allocation5] }
 0x61c   :  { %s847_s13 = vpop.sfrf %846 }
 0x61d   :  { %p879_p6 = scmp.ne.s32.totalorder %s847_s13, 0 }
 0x61f   :  { %851 = shalt.err (%p879_p6)  }
 0x620   :  { %853 = vsyncmov [#allocation5 + $0x1] }
 0x623   :  { %s854_s14 = vpop.sfrf %853 }
 0x624   :  { %p880_p7 = scmp.ne.s32.totalorder %s854_s14, 0 }
 0x626   :  { %858 = shalt.err (%p880_p7)  }
 0x627   :  { %860 = vsyncmov [#allocation5 + $0x2] }
 0x62a   :  { %s861_s1 = vpop.sfrf %860 }
 0x62b   :  { %p881_p8 = scmp.ne.s32.totalorder %s861_s1, 0 }
 0x62d   :  { %865 = shalt.err (%p881_p8)  }

</bundles_post_ra>
